<compile_context>
chip_gen: v5e
topology: v5e:2x2
jax: 0.10.0
libtpu: 0.0.40
codegen_flags: <defaults>
</compile_context>

<pallas_src>
import functools

import jax
import jax.numpy as jnp
from jax.experimental import pallas as pl
from jax.experimental.pallas import tpu as pltpu


def _round_up(a: int, b: int) -> int:
    return (a + b - 1) // b * b


def _weak_learner_kernel(x_ref, w_ref, b_ref, o_ref, acc_ref, *, tanh_factor):
    # x_ref: (tm, tk) bf16/f32, w_ref: (tk, tn) bf16/f32,
    # b_ref: (1, tn) f32, o_ref: (tm, tn) f32, acc_ref: (tm, tn) f32 scratch.
    k = pl.program_id(2)

    @pl.when(k == 0)
    def _():
        acc_ref[...] = jnp.zeros_like(acc_ref)

    acc_ref[...] += jnp.dot(
        x_ref[...], w_ref[...], preferred_element_type=jnp.float32)

    @pl.when(k == pl.num_programs(2) - 1)
    def _():
        inv_f = 1.0 / tanh_factor                       # trace-time constant
        y = acc_ref[...] + b_ref[...]                   # f32 bias broadcast
        o_ref[...] = (jnp.tanh(y * inv_f) * tanh_factor).astype(o_ref.dtype)


def weak_learner_forward(x, weight_t, bias, tanh_factor, *,
                         tm=None, tn=128, tk=512, use_bf16=True):
    """x: (B, ...) f32; weight_t: (K, N) == W.T; bias: (N,). Returns (B, N) f32."""
    B = x.shape[0]
    K, N = weight_t.shape
    x_flat = x.reshape(B, -1)
    assert x_flat.shape[1] == K, (x_flat.shape, K)

    # Tile sizes: sublane-/lane-/MXU-friendly, capped for small problems.
    if tm is None:
        tm = min(256, _round_up(B, 8))
    tn = min(tn, _round_up(N, 128))
    tk = min(tk, _round_up(K, 128))

    Bp = _round_up(B, tm)
    Np = _round_up(N, tn)
    Kp = _round_up(K, tk)

    dot_dtype = jnp.bfloat16 if use_bf16 else jnp.float32
    itemsize = jnp.dtype(dot_dtype).itemsize

    # Zero-pad (zeros contribute nothing to the accumulation); cast matmul
    # inputs to bf16 in HBM so the DMA traffic is halved too.
    xp = jnp.zeros((Bp, Kp), dot_dtype).at[:B, :K].set(x_flat.astype(dot_dtype))
    wp = jnp.zeros((Kp, Np), dot_dtype).at[:K, :N].set(weight_t.astype(dot_dtype))
    bp = jnp.zeros((1, Np), jnp.float32).at[0, :N].set(bias.astype(jnp.float32))

    grid = (Bp // tm, Np // tn, Kp // tk)

    # VMEM budget: double-buffered input/output tiles + accumulator, with headroom.
    tile_bytes = (2 * (tm * tk * itemsize + tk * tn * itemsize
                       + tn * 4 + tm * tn * 4)
                  + tm * tn * 4)
    vmem_limit = int(min(max(4 * tile_bytes, 4 << 20), 32 << 20))

    cost = pl.CostEstimate(
        flops=2 * Bp * Kp * Np,
        transcendentals=Bp * Np,
        bytes_accessed=itemsize * (Bp * Kp + Kp * Np) + 4 * (Np + Bp * Np),
    )

    kernel = functools.partial(_weak_learner_kernel,
                               tanh_factor=float(tanh_factor))

    out_padded = pl.pallas_call(
        kernel,
        out_shape=jax.ShapeDtypeStruct((Bp, Np), jnp.float32),
        grid_spec=pltpu.PrefetchScalarGridSpec(
            num_scalar_prefetch=0,
            grid=grid,
            in_specs=[
                pl.BlockSpec((tm, tk), lambda i, j, k: (i, k)),   # x tile
                pl.BlockSpec((tk, tn), lambda i, j, k: (k, j)),   # W.T tile
                pl.BlockSpec((1, tn), lambda i, j, k: (0, j)),    # bias tile
            ],
            out_specs=pl.BlockSpec((tm, tn), lambda i, j, k: (i, j)),
            scratch_shapes=[pltpu.VMEM((tm, tn), jnp.float32)],
        ),
        compiler_params=pltpu.CompilerParams(
            dimension_semantics=("parallel", "parallel", "arbitrary"),
            vmem_limit_bytes=vmem_limit,
        ),
        cost_estimate=cost,
    )(xp, wp, bp)

    return out_padded[:B, :N]


def init_params(key, input_size, output_size):
    """Deterministic init mimicking VarianceScaling(scale=1.0, fan_in, truncated_normal).

    Keras truncated-normal variance scaling: stddev = sqrt(scale / fan_in) / 0.87962566.
    nn.Linear bias default init: uniform(-1/sqrt(fan_in), 1/sqrt(fan_in)).
    """
    k_w, k_b = jax.random.split(key)
    stddev = (1.0 / input_size) ** 0.5 / 0.87962566103423978
    w = jax.random.truncated_normal(
        k_w, -2.0, 2.0, (input_size, output_size), dtype=jnp.float32) * stddev
    bound = (1.0 / input_size) ** 0.5
    b = jax.random.uniform(
        k_b, (output_size,), minval=-bound, maxval=bound, dtype=jnp.float32)
    return w, b  # w is already (K, N) == weight.T


if __name__ == "__main__":
    key = jax.random.PRNGKey(0)
    k_x, k_p = jax.random.split(key)

    # Small shapes consistent with the module: x (B, C, H, W) flattened to input_size.
    B, C, H, W = 2, 4, 16, 16
    input_size = C * H * W          # 1024
    output_size = 32
    tanh_factor = 2.0

    x = jax.random.normal(k_x, (B, C, H, W), dtype=jnp.float32)
    weight_t, bias = init_params(k_p, input_size, output_size)

    out = weak_learner_forward(x, weight_t, bias, tanh_factor)
    out = jax.block_until_ready(out)

    # Reference check in plain JAX (same math as the PyTorch module, f32).
    ref = jnp.tanh((x.reshape(B, -1) @ weight_t + bias) / tanh_factor) * tanh_factor
    assert out.shape == (B, output_size), out.shape
    # bf16 matmul inputs with f32 accumulation -> loosened tolerance
    # (output is bounded by tanh_factor, so relative error stays controlled).
    max_err = float(jnp.max(jnp.abs(out - ref)))
    assert max_err < 2e-2 * tanh_factor, max_err

    # Also sanity-check the pure-f32 path matches tightly.
    out_f32 = jax.block_until_ready(
        weak_learner_forward(x, weight_t, bias, tanh_factor, use_bf16=False))
    assert jnp.allclose(out_f32, ref, atol=1e-5, rtol=1e-5), \
        float(jnp.max(jnp.abs(out_f32 - ref)))

    print("KERNEL_OK")
</pallas_src>

<mosaic_0001>
module attributes {stable_mosaic.version = 11 : i64} {
  func.func @_weak_learner_kernel(%arg0: i32, %arg1: i32, %arg2: i32, %arg3: memref<8x512xbf16, #tpu.memory_space<vmem>>, %arg4: memref<512x128xbf16, #tpu.memory_space<vmem>>, %arg5: memref<1x128xf32, #tpu.memory_space<vmem>>, %arg6: memref<8x128xf32, #tpu.memory_space<vmem>>, %arg7: memref<8x128xf32, #tpu.memory_space<vmem>>) attributes {dimension_semantics = [#tpu.dimension_semantics<parallel>, #tpu.dimension_semantics<parallel>, #tpu.dimension_semantics<arbitrary>], iteration_bounds = array<i64: 1, 1, 2>, scalar_prefetch = 0 : i64, scratch_operands = 1 : i64, tpu.core_type = #tpu.core_type<tc>, window_params = [{transform_indices = @transform_0, window_bounds = array<i64: 8, 512>}, {transform_indices = @transform_1, window_bounds = array<i64: 512, 128>}, {transform_indices = @transform_2, window_bounds = array<i64: 1, 128>}, {transform_indices = @transform_3, window_bounds = array<i64: 8, 128>}]} {
    %c0_i32 = arith.constant 0 : i32
    %0 = arith.cmpi eq, %arg2, %c0_i32 : i32
    %1 = arith.extui %0 : i1 to i32
    %c0_i32_0 = arith.constant 0 : i32
    %2 = arith.cmpi ne, %1, %c0_i32_0 : i32
    scf.if %2 {
      %cst_9 = arith.constant 0.000000e+00 : f32
      %12 = vector.broadcast %cst_9 : f32 to vector<8x128xf32>
      %c0_10 = arith.constant 0 : index
      %c0_11 = arith.constant 0 : index
      %13 = vector.load %arg7[%c0_10, %c0_11] : memref<8x128xf32, #tpu.memory_space<vmem>>, vector<8x128xf32>
      tpu.vector_store %arg7[%c0_10, %c0_11], %12 {strides = array<i32>} : memref<8x128xf32, #tpu.memory_space<vmem>>, vector<8x128xf32>,
    } else {
    }
    %c0 = arith.constant 0 : index
    %c0_1 = arith.constant 0 : index
    %3 = vector.load %arg7[%c0, %c0_1] : memref<8x128xf32, #tpu.memory_space<vmem>>, vector<8x128xf32>
    %c0_2 = arith.constant 0 : index
    %c0_3 = arith.constant 0 : index
    %4 = vector.load %arg3[%c0_2, %c0_3] : memref<8x512xbf16, #tpu.memory_space<vmem>>, vector<8x512xbf16>
    %c0_4 = arith.constant 0 : index
    %c0_5 = arith.constant 0 : index
    %5 = vector.load %arg4[%c0_4, %c0_5] : memref<512x128xbf16, #tpu.memory_space<vmem>>, vector<512x128xbf16>
    %cst = arith.constant dense<0.000000e+00> : vector<8x128xf32>
    %6 = tpu.matmul %4, %5, %cst {dimension_numbers = #tpu.dot_dimension_numbers<[1], [0], [0], [1], [0, 0, 1, 1], [], []>} : vector<8x512xbf16>, vector<512x128xbf16>, vector<8x128xf32> -> vector<8x128xf32>
    %7 = arith.addf %3, %6 : vector<8x128xf32>
    %c0_6 = arith.constant 0 : index
    %c0_7 = arith.constant 0 : index
    %8 = vector.load %arg7[%c0_6, %c0_7] : memref<8x128xf32, #tpu.memory_space<vmem>>, vector<8x128xf32>
    tpu.vector_store %arg7[%c0_6, %c0_7], %7 {strides = array<i32>} : memref<8x128xf32, #tpu.memory_space<vmem>>, vector<8x128xf32>,
    %c1_i32 = arith.constant 1 : i32
    %9 = arith.cmpi eq, %arg2, %c1_i32 : i32
    %10 = arith.extui %9 : i1 to i32
    %c0_i32_8 = arith.constant 0 : i32
    %11 = arith.cmpi ne, %10, %c0_i32_8 : i32
    scf.if %11 {
      %c0_9 = arith.constant 0 : index
      %c0_10 = arith.constant 0 : index
      %12 = vector.load %arg7[%c0_9, %c0_10] : memref<8x128xf32, #tpu.memory_space<vmem>>, vector<8x128xf32>
      %c0_11 = arith.constant 0 : index
      %c0_12 = arith.constant 0 : index
      %13 = vector.load %arg5[%c0_11, %c0_12] : memref<1x128xf32, #tpu.memory_space<vmem>>, vector<1x128xf32>
      %14 = vector.broadcast %13 : vector<1x128xf32> to vector<8x128xf32>
      %15 = arith.addf %12, %14 : vector<8x128xf32>
      %cst_13 = arith.constant 5.000000e-01 : f32
      %16 = vector.broadcast %cst_13 : f32 to vector<8x128xf32>
      %17 = arith.mulf %15, %16 : vector<8x128xf32>
      %18 = math.tanh %17 : vector<8x128xf32>
      %cst_14 = arith.constant 2.000000e+00 : f32
      %19 = vector.broadcast %cst_14 : f32 to vector<8x128xf32>
      %20 = arith.mulf %18, %19 : vector<8x128xf32>
      %c0_15 = arith.constant 0 : index
      %c0_16 = arith.constant 0 : index
      %21 = vector.load %arg6[%c0_15, %c0_16] : memref<8x128xf32, #tpu.memory_space<vmem>>, vector<8x128xf32>
      tpu.vector_store %arg6[%c0_15, %c0_16], %20 {strides = array<i32>} : memref<8x128xf32, #tpu.memory_space<vmem>>, vector<8x128xf32>,
    } else {
    }
    return
  }
  func.func @transform_0(%arg0: i32, %arg1: i32, %arg2: i32) -> (i32, i32) {
    %c0_i32 = arith.constant 0 : i32
    return %arg0, %arg2 : i32, i32
  }
  func.func @transform_1(%arg0: i32, %arg1: i32, %arg2: i32) -> (i32, i32) {
    %c0_i32 = arith.constant 0 : i32
    return %arg2, %arg1 : i32, i32
  }
  func.func @transform_2(%arg0: i32, %arg1: i32, %arg2: i32) -> (i32, i32) {
    %c0_i32 = arith.constant 0 : i32
    %c0_i32_0 = arith.constant 0 : i32
    return %c0_i32, %arg1 : i32, i32
  }
  func.func @transform_3(%arg0: i32, %arg1: i32, %arg2: i32) -> (i32, i32) {
    %c0_i32 = arith.constant 0 : i32
    return %arg0, %arg1 : i32, i32
  }
}

</mosaic_0001>

<bundles_post_ra>
// kernel: tpu_custom_call.1
= control target key start
LH: loop header
LB: loop body
LE: loop exit
PB: predicated region body
PF: predicated region fallthrough
CT: control target
= control target key end

     0   :  { %8 = vsyncpa [#allocation4], 0  ;;  %s1312_s0 = inlined_call_operand.hbm [shape: bf16[8,1024], index: 0, kind: input, shape index: {}]   ;;  %s1313_s1 = inlined_call_operand.hbm [shape: bf16[1024,128], index: 1, kind: input, shape index: {}]   ;;  %s1314_s2 = inlined_call_operand.vmem [shape: f32[1,128], index: 2, kind: input, shape index: {}]   ;;  %s1315_s3 = inlined_call_operand.hbm [shape: f32[8,128], index: 3, kind: output, shape index: {}]  }
   0x1   :  { %10 = vsyncpa [#allocation4 + $0x1], 0 }
   0x2   :  { %11 = vsyncpa [#allocation7], 0 }
   0x3   :  { %13 = vsyncpa [#allocation7 + $0x1], 0 }
   0x4   :  { %14 = vsyncpa [#allocation5], 0  ;;  %s1157_s12 = smov 0   ;;  %s1159_s13 = smov 0  }
   0x5   :  { %s1161_s14 = smov 0   ;;  %s1163_s15 = smov 0  }
   0x6   :  { %s1165_s16 = smov 0   ;;  %s1167_s17 = smov 0  }
   0x7 LB: > { %s731_s18 = sadd.s32 4294967295, %s1131_s17   ;;  %s32_s19 = sadd.s32 1, %s1127_s16  ;;  %s1131_s17 = sphi %s1167_s17, %s20_s17   ;;  %s1127_s16 = sphi %s1165_s16, %s1323_s16   ;;  %s1123_s15 = sphi %s1163_s15, %s1322_s15   ;;  %s1119_s14 = sphi %s1161_s14, %s1321_s14   ;;  %s1115_s13 = sphi %s1159_s13, %s1320_s13   ;;  %s1111_s12 = sphi %s1157_s12, %s1319_s12  }
   0x8   : > { %p33_p0 = scmp.ge.s32.totalorder %s32_s19, 2  ;;  %s48_s20 = sadd.s32 1, %s1119_s14 }
   0x9   : > { %p55_p1 = scmp.ne.s32.totalorder %s1119_s14, %s1115_s13  ;;  %p56_p2 = scmp.eq.s32.totalorder %s1131_s17, 0 }
   0xa   : > { %s1325_s19 = smov (%p33_p0, %s32_s19), 0  ;;  %p61_p4 = scmp.ne.s32.totalorder %s1115_s13, %s1111_s12 }
   0xb   : > { %p1193_p3 = por %p56_p2, %p55_p1  ;;  %s44_s22 = ssub.s32 %s1127_s16, %s1325_s19 }
   0xc   : > { %p62_p5 = scmp.eq.s32.totalorder %s731_s18, 0  ;;  %p46_p6 = scmp.eq.s32.totalorder %s44_s22, 0 }
   0xd   : > { %p927_p8 = scmp.lt.s32.totalorder %s1131_s17, 2  ;;  %s1211_s25 = sand.u32 1, %s1119_s14  }
   0xe   : > { %p1202_p7 = por %p62_p5, %p61_p4  ;;  %s878_s26 = sshll.u32 %s1127_s16, 4 }
   0xf   : > { %s1208_s24 = scalar_select %p46_p6, %s1119_s14, %s48_s20  }
  0x10   : > { %s735_s27 = sshll.u32 %s1211_s25, 4  ;;  %s184_s30 = scalar_lea.hbm %s1312_s0, %s878_s26 }
  0x11   : > { %s186_s4 = sshll.u32 %s184_s30, 4  ;;  %s177_s5 = scalar_lea.vmem [#allocation3], %s735_s27  ;;  %s187_s4 = int_to_ptr.hbm [resolvable:$true] %s186_s4 }
  0x12   : > { %s188_s6 = sshll.u32 %s177_s5, 4  ;;  %p1220_p9 = pnand %p927_p8, %p1193_p3  ;;  %s189_s6 = int_to_ptr.vmem [resolvable:$true] %s188_s6 }
  0x13   : > { %p741_p10 = scmp.ge.s32.totalorder %s1131_s17, 1  ;;  %p216_p11 = scmp.lt.s32.totalorder %s1131_s17, 3 }
  0x14   : > { %s738_s8 = sshll.u32 %s1211_s25, 8  ;;  %s174_s9 = scalar_lea.sflag [#allocation4], %s1211_s25 }
  0x15   : > { %923 = dma.hbm_to_vmem [thread:$0]  (!%p1220_p9), %s187_s4, 256, %s189_s6, %s174_s9  }
  0x16   : > { %p217_p12 = pnand %p741_p10, %p216_p11  ;;  %s879_s10 = sshll.u32 %s1127_s16, 8 }
  0x17   : > { %s199_s11 = scalar_lea.vmem [#allocation6], %s738_s8  ;;  %s205_s21 = scalar_lea.hbm %s1313_s1, %s879_s10 }
  0x18   : > { %s208_s12 = sshll.u32 %s199_s11, 4  ;;  %s206_s26 = sshll.u32 %s205_s21, 4  ;;  %s209_s12 = int_to_ptr.vmem [resolvable:$true] %s208_s12  ;;  %s207_s26 = int_to_ptr.hbm [resolvable:$true] %s206_s26 }
  0x19   : > { %s196_s27 = scalar_lea.sflag [#allocation7], %s1211_s25  ;;  %s1133_s28 = smov 64  }
  0x1a   : > { %s1134_s29 = smov 4   ;;  %220 = sbr.rel (%p217_p12) target bundleno = 244 (0xf4), region = 32 }
  0x1b   : > { %926 = dma.hbm_to_vmem [thread:$0]  (!%p1220_p9), %s207_s26, 4096, %s209_s12, %s196_s27, %s1133_s28, %s1133_s28, %s1134_s29  }
  0x1c   : > { %s222_s30 = sand.u32 (!%p217_p12), 1, %s1115_s13  }
  0x1d   : > { %s742_s4 = sshll.u32 (!%p217_p12), %s222_s30, 4  ;;  %s223_s5 = scalar_lea.sflag (!%p217_p12), [#allocation4], %s222_s30 }
  0x1e   : > { %s1238_s6 = scalar_lea.vmem (!%p217_p12), [#allocation3], %s742_s4 }
  0x1f   : > { %1098 = dma.done.wait (%p1202_p7), %s223_s5, 256  }
  0x20   : > { %1100 = vsyncadd (%p1202_p7), %s223_s5, 4294967040  ;;  %s743_s8 = sshll.u32 %s222_s30, 8  ;;  %s233_s25 = scalar_lea.sflag [#allocation7], %s222_s30 }
  0x21   : > { %s1244_s9 = scalar_lea.vmem [#allocation6], %s743_s8 }
  0x22   : > { %1102 = dma.done.wait (%p1202_p7), %s233_s25, 4096  }
  0x23   : > { %1104 = vsyncadd (%p1202_p7), %s233_s25, 4294963200  ;;  %p744_p13 = scmp.ne.s32.totalorder %s1123_s15, 0 }
  0x25   : > { %271 = sbr.rel (%p744_p13) target bundleno = 44 (0x2c), region = 44 }
  0x2a   : > { %v1135_v0 = vmov 0.0  }
  0x2b   : > { %272 = vst [vmem:[#allocation2] sm:$0xff] %v1135_v0 }
  0x2c PF: > { %v887_v1 = vld [vmem:[%s1244_s9 + $0x38] sm:$0xff]  ;;  %v886_v5 = vld [vmem:[%s1244_s9 + $0x30] sm:$0xff]  ;;  %v885_v9 = vld [vmem:[%s1244_s9 + $0x28] sm:$0xff]  ;;  %p873_p0 = scmp.ne.s32.totalorder %s1123_s15, 1 }
  0x2d   : > { %v895_v2 = vld [vmem:[%s1244_s9 + $0x78] sm:$0xff]  ;;  %546 = vmatpush.bf16.msra.mxu0 %v887_v1  ;;  %v894_v6 = vld [vmem:[%s1244_s9 + $0x70] sm:$0xff]  ;;  %v893_v10 = vld [vmem:[%s1244_s9 + $0x68] sm:$0xff] }
  0x2e   : > { %v903_v3 = vld [vmem:[%s1244_s9 + $0xb8] sm:$0xff]  ;;  %559 = vmatpush.bf16.msra.mxu1 %v895_v2  ;;  %v902_v7 = vld [vmem:[%s1244_s9 + $0xb0] sm:$0xff]  ;;  %v901_v11 = vld [vmem:[%s1244_s9 + $0xa8] sm:$0xff] }
  0x2f   : > { %v911_v4 = vld [vmem:[%s1244_s9 + $0xf8] sm:$0xff]  ;;  %572 = vmatpush.bf16.msra.mxu2 %v903_v3  ;;  %v910_v8 = vld [vmem:[%s1244_s9 + $0xf0] sm:$0xff]  ;;  %v909_v12 = vld [vmem:[%s1244_s9 + $0xe8] sm:$0xff] }
  0x30   : > { %585 = vmatpush.bf16.msra.mxu3 %v911_v4  ;;  %v884_v13 = vld [vmem:[%s1244_s9 + $0x20] sm:$0xff]  ;;  %v883_v17 = vld [vmem:[%s1244_s9 + $0x18] sm:$0xff]  ;;  %v882_v21 = vld [vmem:[%s1244_s9 + $0x10] sm:$0xff] }
  0x31   : > { %547 = vmatpush.bf16.msra.mxu0 %v886_v5  ;;  %v892_v14 = vld [vmem:[%s1244_s9 + $0x60] sm:$0xff]  ;;  %v891_v18 = vld [vmem:[%s1244_s9 + $0x58] sm:$0xff]  ;;  %v890_v22 = vld [vmem:[%s1244_s9 + $0x50] sm:$0xff] }
  0x32   : > { %560 = vmatpush.bf16.msra.mxu1 %v894_v6  ;;  %v900_v15 = vld [vmem:[%s1244_s9 + $0xa0] sm:$0xff]  ;;  %v899_v19 = vld [vmem:[%s1244_s9 + $0x98] sm:$0xff]  ;;  %v898_v23 = vld [vmem:[%s1244_s9 + $0x90] sm:$0xff] }
  0x33   : > { %573 = vmatpush.bf16.msra.mxu2 %v902_v7  ;;  %v908_v16 = vld [vmem:[%s1244_s9 + $0xe0] sm:$0xff]  ;;  %v907_v20 = vld [vmem:[%s1244_s9 + $0xd8] sm:$0xff]  ;;  %v906_v24 = vld [vmem:[%s1244_s9 + $0xd0] sm:$0xff] }
  0x34   : > { %586 = vmatpush.bf16.msra.mxu3 %v910_v8  ;;  %v881_v25 = vld [vmem:[%s1244_s9 + $0x8] sm:$0xff]  ;;  %v274_v27 = vld [vmem:[%s1238_s6] sm:$0xff]  ;;  %v273_v51 = vld [vmem:[#allocation2] sm:$0xff] }
  0x35   : > { %548 = vmatpush.bf16.msra.mxu0 %v885_v9  ;;  %v889_v26 = vld [vmem:[%s1244_s9 + $0x48] sm:$0xff]  ;;  %v342_v31 = vunpack.c.l.b16 %v274_v27  ;;  %v343_v32 = vunpack.c.h.b16 %v274_v27  ;;  %v880_v33 = vld [vmem:[%s1244_s9] sm:$0xff] }
  0x36   : > { %561 = vmatpush.bf16.msra.mxu1 %v893_v10  ;;  %v897_v28 = vld [vmem:[%s1244_s9 + $0x88] sm:$0xff]  ;;  %v888_v34 = vld [vmem:[%s1244_s9 + $0x40] sm:$0xff] }
  0x37   : > { %574 = vmatpush.bf16.msra.mxu2 %v901_v11  ;;  %v905_v29 = vld [vmem:[%s1244_s9 + $0xc8] sm:$0xff]  ;;  %v896_v37 = vld [vmem:[%s1244_s9 + $0x80] sm:$0xff]  ;;  %v346_v39 = vpack.c.b16 %v342_v31, %v342_v31  ;;  %v347_v40 = vpack.c.b16 %v343_v32, %v343_v32 }
  0x38   : > { %587 = vmatpush.bf16.msra.mxu3 %v909_v12  ;;  %v275_v30 = vld [vmem:[%s1238_s6 + $0x8] sm:$0xff]  ;;  %v904_v38 = vld [vmem:[%s1244_s9 + $0xc0] sm:$0xff] }
  0x39   : > { %549 = vmatpush.bf16.msra.mxu0 %v884_v13  ;;  %v344_v35 = vunpack.c.l.b16 %v275_v30  ;;  %v345_v36 = vunpack.c.h.b16 %v275_v30 }
  0x3a   : > { %562 = vmatpush.bf16.msra.mxu1 %v892_v14 }
  0x3b   : > { %575 = vmatpush.bf16.msra.mxu2 %v900_v15  ;;  %v348_v41 = vpack.c.b16 %v344_v35, %v344_v35  ;;  %v349_v42 = vpack.c.b16 %v345_v36, %v345_v36 }
  0x3c   : > { %588 = vmatpush.bf16.msra.mxu3 %v908_v16 }
  0x3d   : > { %550 = vmatpush.bf16.msra.mxu0 %v883_v17 }
  0x3e   : > { %563 = vmatpush.bf16.msra.mxu1 %v891_v18 }
  0x3f   : > { %576 = vmatpush.bf16.msra.mxu2 %v899_v19 }
  0x40   : > { %589 = vmatpush.bf16.msra.mxu3 %v907_v20 }
  0x41   : > { %551 = vmatpush.bf16.msra.mxu0 %v882_v21 }
  0x42   : > { %564 = vmatpush.bf16.msra.mxu1 %v890_v22 }
  0x43   : > { %577 = vmatpush.bf16.msra.mxu2 %v898_v23 }
  0x44   : > { %590 = vmatpush.bf16.msra.mxu3 %v906_v24 }
  0x45   : > { %552 = vmatpush.bf16.msra.mxu0 %v881_v25 }
  0x46   : > { %565 = vmatpush.bf16.msra.mxu1 %v889_v26 }
  0x47   : > { %578 = vmatpush.bf16.msra.mxu2 %v897_v28 }
  0x48   : > { %591 = vmatpush.bf16.msra.mxu3 %v905_v29 }
  0x49   : > { %553 = vmatpush.bf16.msra.mxu0 %v880_v33 }
  0x4a   : > { %566 = vmatpush.bf16.msra.mxu1 %v888_v34 }
  0x4b   : > { %579 = vmatpush.bf16.msra.mxu2 %v896_v37 }
  0x4c   : > { %592 = vmatpush.bf16.msra.mxu3 %v904_v38  ;;  %554 = vmatmul.bf16.vlgmr.msra.gmra.mxu0 %v346_v39 }
  0x4d   : > { %567 = vmatmul.bf16.vlgmr.msra.gmra.mxu1 %v347_v40 }
  0x4e   : > { %580 = vmatmul.bf16.vlgmr.msra.gmra.mxu2 %v348_v41 }
  0x4f   : > { %593 = vmatmul.bf16.vlgmr.msra.gmra.mxu3 %v349_v42 }
  0xc9   : > { %v555_v43 = vpop.f32.mrf.mxu0 }
  0xca   : > { %v568_v44 = vpop.f32.mrf.mxu1 }
  0xcb   : > { %v569_v45 = vadd.f32 %v568_v44, %v555_v43 }
  0xd1   : > { %v581_v46 = vpop.f32.mrf.mxu2  ;;  %v557_v49 = vpop.f32.mrf.mxu0 }
  0xd2   : > { %v594_v47 = vpop.f32.mrf.mxu3  ;;  %v582_v48 = vadd.f32 %v581_v46, %v569_v45  ;;  %v570_v50 = vpop.f32.mrf.mxu1 }
  0xd4   : > { %v595_v52 = vadd.f32 %v594_v47, %v582_v48 }
  0xd6   : > { %v598_v53 = vadd.f32 %v595_v52, %v273_v51  ;;  %603 = sbr.rel (%p873_p0) target bundleno = 238 (0xee), region = 48 }
  0xd8   : > { %599 = vst [vmem:[#allocation2] sm:$0xff] %v598_v53 }
  0xd9   : > { %v583_v54 = vpop.f32.mrf.mxu2 }
  0xda   : > { %v596_v55 = vpop.f32.mrf.mxu3 }
  0xdb   : > { %v982_v57 = vld [vmem:[%s1314_s2] ss:$0 sm:$0xff] }
  0xdf   : > { %v604_v56 = vld [vmem:[#allocation2] sm:$0xff] }
  0xe0   : > { %v609_v58 = vadd.f32 %v982_v57, %v604_v56 }
  0xe2   : > { %v610_v59 = vmul.f32 0.5, %v609_v58 }
  0xe4   : > { %983 = vtanh.f32 %v610_v59 }
  0xea   : > { %v984_v60 = vpop.eup %983 }
  0xeb   : > { %v612_v61 = vmul.f32 2.0, %v984_v60 }
  0xed   : > { %613 = vst [vmem:[#allocation8] sm:$0xff] %v612_v61 }
  0xee PF: > { %p928_p1 = scmp.eq.s32.totalorder %s731_s18, 1  ;;  %s625_s15 = sshll.u32 %s1315_s3, 4  ;;  %s626_s15 = int_to_ptr.hbm [resolvable:$true] %s625_s15 }
  0xef   : > { %s1136_s12 = smov [#allocation8]  }
  0xf0   : > { %s623_s20 = sshll.u32 %s1136_s12, 4  ;;  %s624_s20 = int_to_ptr.vmem [resolvable:$true] %s623_s20 }
  0xf1   : > { %917 = dma.vmem_to_hbm [thread:$0]  (%p928_p1), %s624_s20, 128, %s626_s15, [#allocation5]  }
  0xf2   : > { %1106 = dma.done.wait (%p928_p1), [#allocation5], 128  }
  0xf3   : > { %1108 = vsyncadd (%p928_p1), [#allocation5], 4294967168 }
  0xf4 PF: > { %s20_s17 = sadd.s32 1, %s1131_s17   ;;  %s1319_s12 = smov %s1115_s13 }
  0xf5   : > { %p17_p2 = scmp.ge.s32.totalorder %s20_s17, 4   ;;  %s1320_s13 = smov %s1119_s14 }
  0xf6   : > { %s1321_s14 = smov %s1208_s24  ;;  %s1322_s15 = smov %s1127_s16 }
  0xf7   : > { %s1323_s16 = smov %s1325_s19  ;;  %19 = sbr.rel (!%p17_p2) target bundleno = 7 (0x7), region = 94 }
  0xfc   :  { %639 = vsyncpa [#allocation4], 1 }
  0xfd   :  { %641 = vsyncpa [#allocation4 + $0x1], 1 }
  0xfe   :  { %642 = vsyncpa [#allocation7], 1 }
  0xff   :  { %644 = vsyncpa [#allocation7 + $0x1], 1 }
 0x100   :  { %645 = vsyncpa [#allocation5], 1 }
 0x101   :  { %647 = vsyncpa [#allocation5 + $0x1], 1 }

</bundles_post_ra>
